<compile_context>
chip_gen: v7x
topology: tpu7x:2x2x1
jax: 0.10.0
libtpu: 0.0.40
codegen_flags: <defaults>
</compile_context>

<pallas_src>
import functools

import jax
import jax.numpy as jnp
from jax import lax
from jax.experimental import pallas as pl
from jax.experimental.pallas import tpu as pltpu


# ---------------------------------------------------------------------------
# Chip-aware VMEM budget
# ---------------------------------------------------------------------------
def _vmem_budget_bytes():
    """Scoped-VMEM budget: physical per-core capacity minus ~15% headroom."""
    cap = 64 * 1024 * 1024  # safe fallback = smallest per-TC VMEM (v7x)
    try:
        cap = int(getattr(pltpu.get_tpu_info(), "vmem_capacity_bytes", cap))
    except Exception:
        pass
    return int(cap * 0.85)


# ---------------------------------------------------------------------------
# Fused single-kernel path (everything resident in VMEM, batched over views)
# ---------------------------------------------------------------------------
def _fused_kernel(w_ref, a_ref, i_ref, asum_ref, h_ref, loss_ref,
                  *, mu, alpha, V, n, mm_dtype):
    W = w_ref[...]                                        # (V, n, n)
    A = a_ref[...]                                        # (n, n)
    A_mm = A.astype(mm_dtype)

    # ---- stage 1 (all views batched): H_v = S_v A S_v^T --------------------
    rowsum = jnp.sum(W, axis=2, keepdims=True)            # (V, n, 1)
    d_inv = lax.rsqrt(rowsum)                             # 1/sqrt(deg)
    S = W * d_inv * jnp.swapaxes(d_inv, 1, 2)             # D^-1/2 W D^-1/2
    S_mm = S.astype(mm_dtype)

    # One (V*n, n) x (n, n) matmul instead of V tiny ones (fills the MXU).
    SA = lax.dot_general(S_mm.reshape(V * n, n), A_mm,
                         (((1,), (0,)), ((), ())),
                         preferred_element_type=jnp.float32).reshape(V, n, n)
    # H_v = SA_v @ S_v^T as one batched NT matmul (no materialized S^T).
    H = jnp.einsum('vik,vjk->vij', SA.astype(mm_dtype), S_mm,
                   preferred_element_type=jnp.float32)    # (V, n, n)
    h_ref[...] = H

    A_sum = jnp.sum(H, axis=0)                            # (n, n)
    asum_ref[...] = A_sum
    loss = mu * jnp.sum(H * H) * (1.0 / (n * n))          # sum_v mu*mean(H_v^2)

    # ---- glue: A_new = alpha * sum_v H_v + (1-alpha) * I --------------------
    A_new = alpha * A_sum + (1.0 - alpha) * i_ref[...]
    A_new_mm = A_new.astype(mm_dtype)
    rn2_row = jnp.sum(A_new * A_new, axis=1, keepdims=True).T   # (1, n)

    # ---- stage 2 (batched): loss += trace(A^T (D - (wn+wn^T)) A) / n --------
    #   = ( sum_i d_i*||A[i,:]||^2  -  2*sum(A * (wn @ A)) ) / n
    colsum = jnp.sum(H, axis=1, keepdims=True)            # (V, 1, n)
    dc_inv = lax.rsqrt(colsum)
    d = colsum * dc_inv                                   # sqrt(colsum)
    wn = H * jnp.swapaxes(dc_inv, 1, 2) * dc_inv          # (V, n, n)
    wnA = lax.dot_general(wn.astype(mm_dtype).reshape(V * n, n), A_new_mm,
                          (((1,), (0,)), ((), ())),
                          preferred_element_type=jnp.float32).reshape(V, n, n)
    term_w = 2.0 * jnp.sum(A_new * wnA)
    term_d = jnp.sum(d * rn2_row)
    loss = loss + (term_d - term_w) * (1.0 / n)

    loss_ref[...] = jnp.full(loss_ref.shape, loss, dtype=jnp.float32)


def _dssne_fused(W, A_param, I, mu, alpha, mm_dtype, vmem_budget):
    V, n, _ = W.shape
    kernel = functools.partial(_fused_kernel, mu=mu, alpha=alpha, V=V, n=n,
                               mm_dtype=mm_dtype)
    # No grid: whole arrays as single VMEM blocks (no double-buffering).
    A_sum, H, loss_slab = pl.pallas_call(
        kernel,
        out_shape=(
            jax.ShapeDtypeStruct((n, n), jnp.float32),
            jax.ShapeDtypeStruct((V, n, n), jnp.float32),
            jax.ShapeDtypeStruct((1, 128), jnp.float32),   # lane-dense scalar slab
        ),
        compiler_params=pltpu.CompilerParams(vmem_limit_bytes=vmem_budget),
    )(W, A_param, I)
    return A_sum, H, loss_slab[0, 0]


# ---------------------------------------------------------------------------
# Staged (two pallas_call) path for large n — per-view "parallel" grid
# (megacore-shardable on v7x), per-view partial losses summed in XLA.
# ---------------------------------------------------------------------------
def _stage1_kernel(w_ref, a_ref, h_ref, loss_ref, *, mu, n, mm_dtype):
    w = w_ref[0]
    A = a_ref[...]
    rowsum = jnp.sum(w, axis=1, keepdims=True)             # (n, 1)
    d_inv = lax.rsqrt(rowsum)
    S = w * d_inv * d_inv.T                                # D^-1/2 W D^-1/2
    S_mm = S.astype(mm_dtype)
    SA = lax.dot_general(S_mm, A.astype(mm_dtype), (((1,), (0,)), ((), ())),
                         preferred_element_type=jnp.float32)
    # contract S's last axis directly (== SA @ S^T, no materialized S.T)
    H = lax.dot_general(SA.astype(mm_dtype), S_mm, (((1,), (1,)), ((), ())),
                        preferred_element_type=jnp.float32)
    h_ref[0] = H
    part = mu * jnp.sum(H * H) * (1.0 / (n * n))
    loss_ref[...] = jnp.full(loss_ref.shape, part, dtype=jnp.float32)


def _stage2_kernel(h_ref, a_ref, rn2_ref, loss_ref, *, n, mm_dtype):
    H = h_ref[0]
    A = a_ref[...]                                         # A_new (n, n)
    rn2 = rn2_ref[...]                                     # (1, n): ||A[i,:]||^2
    colsum = jnp.sum(H, axis=0, keepdims=True)             # (1, n)
    d_inv = lax.rsqrt(colsum)
    d = colsum * d_inv                                     # sqrt(colsum)
    wn = H * d_inv.T * d_inv
    wnA = lax.dot_general(wn.astype(mm_dtype), A.astype(mm_dtype),
                          (((1,), (0,)), ((), ())),
                          preferred_element_type=jnp.float32)
    part = (jnp.sum(d * rn2) - 2.0 * jnp.sum(A * wnA)) * (1.0 / n)
    loss_ref[...] = jnp.full(loss_ref.shape, part, dtype=jnp.float32)


def _dssne_staged(W, A_param, I, mu, alpha, mm_dtype, vmem_budget):
    V, n, _ = W.shape
    cp = pltpu.CompilerParams(dimension_semantics=("parallel",),
                              vmem_limit_bytes=vmem_budget)
    # TODO(synk): for n large enough that whole-(n,n) per-view blocks no longer
    # fit the VMEM budget (~1.2k on v7x, ~2k on v5e/v6e), switch to a K-tiled
    # matmul grid (grid=(V, n//tn, k), f32 VMEM accumulator, reduction last).

    H, loss1_slab = pl.pallas_call(
        functools.partial(_stage1_kernel, mu=mu, n=n, mm_dtype=mm_dtype),
        grid=(V,),
        in_specs=[
            pl.BlockSpec((1, n, n), lambda v: (v, 0, 0)),
            pl.BlockSpec((n, n), lambda v: (0, 0)),
        ],
        out_specs=(
            pl.BlockSpec((1, n, n), lambda v: (v, 0, 0)),
            pl.BlockSpec((1, 1, 128), lambda v: (v, 0, 0)),
        ),
        out_shape=(
            jax.ShapeDtypeStruct((V, n, n), jnp.float32),
            jax.ShapeDtypeStruct((V, 1, 128), jnp.float32),
        ),
        compiler_params=cp,
    )(W, A_param)

    # Tiny O(V*n^2) XLA glue: sum over views, identity mix, and the A_new
    # row-norms hoisted out of the stage-2 kernel (computed once, not V times).
    A_sum = jnp.sum(H, axis=0)
    A_new = alpha * A_sum + (1.0 - alpha) * I
    rn2_row = jnp.sum(A_new * A_new, axis=1, keepdims=True).T   # (1, n)

    loss2_slab = pl.pallas_call(
        functools.partial(_stage2_kernel, n=n, mm_dtype=mm_dtype),
        grid=(V,),
        in_specs=[
            pl.BlockSpec((1, n, n), lambda v: (v, 0, 0)),
            pl.BlockSpec((n, n), lambda v: (0, 0)),
            pl.BlockSpec((1, n), lambda v: (0, 0)),
        ],
        out_specs=pl.BlockSpec((1, 1, 128), lambda v: (v, 0, 0)),
        out_shape=jax.ShapeDtypeStruct((V, 1, 128), jnp.float32),
        compiler_params=cp,
    )(H, A_new, rn2_row)

    loss = jnp.sum(loss1_slab[:, 0, 0]) + jnp.sum(loss2_slab[:, 0, 0])
    return A_sum, H, loss


# ---------------------------------------------------------------------------
# Public wrapper
# ---------------------------------------------------------------------------
def dssne_forward(W, A_param, I, mu, alpha_raw, *,
                  matmul_dtype=jnp.float32, force_staged=False):
    """Pallas implementation of DSSNE.forward.

    Args:
      W:       (V, n, n) float32 stack of dense adjacency views.
      A_param: (n, n) float32 parameter A (module initializes it to I).
      I:       (n, n) float32 identity.
      mu, alpha_raw: python floats (alpha is used as 1/(1+alpha_raw)).
      matmul_dtype: set to jnp.bfloat16 on v6e/v7x for large-n performance
        runs (MXU is bf16-native); accumulation stays f32.  Default f32 keeps
        exact parity with the reference within 1e-3.
      force_staged: force the two-kernel large-n path (for testing).
    Returns:
      (sum of A_tmp over views, stacked A_tmp (V, n, n), scalar loss)
    """
    V, n, _ = W.shape
    alpha = 1.0 / (1.0 + alpha_raw)
    budget = _vmem_budget_bytes()

    # Fused working set: single-buffered whole-array I/O ((2V+3)*n^2) plus
    # live temps (~(3V+3)*n^2), with ~30% margin for compiler scratch.
    fused_est = int((5 * V + 6) * n * n * 4 * 1.3)
    if (not force_staged) and (n % 8 == 0) and fused_est <= budget:
        return _dssne_fused(W, A_param, I, mu, alpha, matmul_dtype, budget)
    return _dssne_staged(W, A_param, I, mu, alpha, matmul_dtype, budget)


def dssne_reference(W, A_param, I, mu, alpha_raw):
    """Pure-JAX transliteration of the PyTorch forward, for verification."""
    alpha = 1.0 / (1.0 + alpha_raw)
    n = W.shape[1]
    A_tmp = []
    loss = jnp.float32(0.0)
    for v in range(W.shape[0]):
        w = W[v]
        h = w.sum(1)
        d_inv = 1.0 / jnp.sqrt(h)
        S = w * (d_inv[:, None] * d_inv[None, :])
        H = S @ A_param @ S.T
        loss = loss + mu * jnp.mean(H * H)
        A_tmp.append(H)
    A_sum = sum(A_tmp)
    A = alpha * A_sum + (1.0 - alpha) * I
    for H in A_tmp:
        h = H.sum(0)
        d = jnp.sqrt(h)
        D = jnp.diag(d)
        d_inv = 1.0 / d
        wn = H * (d_inv[:, None] * d_inv[None, :])
        wn = wn + wn.T
        loss = loss + jnp.trace(A.T @ ((D - wn) @ A)) / n
    return A_sum, A_tmp, loss


def _make_views(key, V, n):
    # Deterministic symmetric non-negative adjacency views with positive degrees.
    keys = jax.random.split(key, V)
    views = []
    for kv in keys:
        x = jax.random.uniform(kv, (n, n), dtype=jnp.float32)
        views.append(0.5 * (x + x.T) + jnp.eye(n, dtype=jnp.float32))
    return jnp.stack(views, axis=0)


if __name__ == "__main__":
    root = jax.random.PRNGKey(0)
    k_small, k_big = jax.random.split(root, 2)
    mu = 0.5
    alpha_raw = 1.0

    # ---- small case: fused single-kernel path (n=32, V=3) -------------------
    n, V = 32, 3
    W = _make_views(k_small, V, n)
    I = jnp.eye(n, dtype=jnp.float32)
    A_param = I  # module sets self.A.data = I

    A_sum, H, loss = dssne_forward(W, A_param, I, mu, alpha_raw)
    (A_sum, H, loss) = jax.block_until_ready((A_sum, H, loss))

    r_sum, r_tmp, r_loss = dssne_reference(W, A_param, I, mu, alpha_raw)
    assert jnp.all(jnp.isfinite(A_sum)) and jnp.isfinite(loss)
    assert jnp.allclose(A_sum, r_sum, rtol=1e-3, atol=1e-3)
    assert jnp.allclose(H, jnp.stack(r_tmp), rtol=1e-3, atol=1e-3)
    assert jnp.allclose(loss, r_loss, rtol=1e-3, atol=1e-3)

    # ---- exercise the staged (two-kernel, per-view parallel grid) path too --
    n2, V2 = 128, 2
    W2 = _make_views(k_big, V2, n2)
    I2 = jnp.eye(n2, dtype=jnp.float32)
    A2 = I2

    A_sum2, H2, loss2 = dssne_forward(W2, A2, I2, mu, alpha_raw,
                                      force_staged=True)
    (A_sum2, H2, loss2) = jax.block_until_ready((A_sum2, H2, loss2))

    r_sum2, r_tmp2, r_loss2 = dssne_reference(W2, A2, I2, mu, alpha_raw)
    assert jnp.allclose(A_sum2, r_sum2, rtol=1e-3, atol=1e-3)
    assert jnp.allclose(H2, jnp.stack(r_tmp2), rtol=1e-3, atol=1e-3)
    assert jnp.allclose(loss2, r_loss2, rtol=1e-3, atol=1e-3)

    print("KERNEL_OK")
</pallas_src>

<mosaic_0001>
module attributes {stable_mosaic.version = 11 : i64} {
  func.func @_fused_kernel(%arg0: memref<3x32x32xf32, #tpu.memory_space<vmem>>, %arg1: memref<32x32xf32, #tpu.memory_space<vmem>>, %arg2: memref<32x32xf32, #tpu.memory_space<vmem>>, %arg3: memref<32x32xf32, #tpu.memory_space<vmem>>, %arg4: memref<3x32x32xf32, #tpu.memory_space<vmem>>, %arg5: memref<1x128xf32, #tpu.memory_space<vmem>>) attributes {dimension_semantics = [], scalar_prefetch = 0 : i64, scratch_operands = 0 : i64, tpu.core_type = #tpu.core_type<tc>} {
    %c0 = arith.constant 0 : index
    %c0_0 = arith.constant 0 : index
    %c0_1 = arith.constant 0 : index
    %0 = vector.load %arg0[%c0, %c0_0, %c0_1] : memref<3x32x32xf32, #tpu.memory_space<vmem>>, vector<3x32x32xf32>
    %c0_2 = arith.constant 0 : index
    %c0_3 = arith.constant 0 : index
    %1 = vector.load %arg1[%c0_2, %c0_3] : memref<32x32xf32, #tpu.memory_space<vmem>>, vector<32x32xf32>
    %cst = arith.constant dense<0.000000e+00> : vector<3x32xf32>
    %2 = vector.multi_reduction <add>, %0, %cst [2] : vector<3x32x32xf32> to vector<3x32xf32>
    %3 = vector.shape_cast %2 : vector<3x32xf32> to vector<3x32x1xf32>
    %4 = math.rsqrt %3 : vector<3x32x1xf32>
    %5 = vector.broadcast %4 : vector<3x32x1xf32> to vector<3x32x32xf32>
    %6 = arith.mulf %0, %5 : vector<3x32x32xf32>
    %7 = tpu.transpose %4, [0, 2, 1] : vector<3x32x1xf32> -> vector<3x1x32xf32>
    %8 = vector.broadcast %7 : vector<3x1x32xf32> to vector<3x32x32xf32>
    %9 = arith.mulf %6, %8 : vector<3x32x32xf32>
    %10 = vector.shape_cast %9 : vector<3x32x32xf32> to vector<96x32xf32>
    %cst_4 = arith.constant dense<0.000000e+00> : vector<96x32xf32>
    %11 = tpu.matmul %10, %1, %cst_4 {dimension_numbers = #tpu.dot_dimension_numbers<[1], [0], [0], [1], [0, 0, 1, 1], [], []>} : vector<96x32xf32>, vector<32x32xf32>, vector<96x32xf32> -> vector<96x32xf32>
    %12 = vector.shape_cast %11 : vector<96x32xf32> to vector<3x32x32xf32>
    "tpu.trace_start"() <{level = 10 : i32, message = "vik,vjk->vij"}> : () -> ()
    %cst_5 = arith.constant dense<0.000000e+00> : vector<3x32x32xf32>
    %13 = tpu.matmul %12, %9, %cst_5 {dimension_numbers = #tpu.dot_dimension_numbers<[2], [2], [1], [1], [0, 0, 0, 1, 1, 1], [0], [0]>} : vector<3x32x32xf32>, vector<3x32x32xf32>, vector<3x32x32xf32> -> vector<3x32x32xf32>
    "tpu.trace_stop"() : () -> ()
    %c0_6 = arith.constant 0 : index
    %c0_7 = arith.constant 0 : index
    %c0_8 = arith.constant 0 : index
    %14 = vector.load %arg4[%c0_6, %c0_7, %c0_8] : memref<3x32x32xf32, #tpu.memory_space<vmem>>, vector<3x32x32xf32>
    tpu.vector_store %arg4[%c0_6, %c0_7, %c0_8], %13 {strides = array<i32>} : memref<3x32x32xf32, #tpu.memory_space<vmem>>, vector<3x32x32xf32>,
    %cst_9 = arith.constant dense<0.000000e+00> : vector<32x32xf32>
    %15 = vector.multi_reduction <add>, %13, %cst_9 [0] : vector<3x32x32xf32> to vector<32x32xf32>
    %c0_10 = arith.constant 0 : index
    %c0_11 = arith.constant 0 : index
    %16 = vector.load %arg3[%c0_10, %c0_11] : memref<32x32xf32, #tpu.memory_space<vmem>>, vector<32x32xf32>
    tpu.vector_store %arg3[%c0_10, %c0_11], %15 {strides = array<i32>} : memref<32x32xf32, #tpu.memory_space<vmem>>, vector<32x32xf32>,
    %17 = arith.mulf %13, %13 : vector<3x32x32xf32>
    %18 = vector.shape_cast %17 : vector<3x32x32xf32> to vector<1x3x32x32xf32>
    %cst_12 = arith.constant dense<0.000000e+00> : vector<1xf32>
    %19 = vector.multi_reduction <add>, %18, %cst_12 [1, 2, 3] : vector<1x3x32x32xf32> to vector<1xf32>
    %20 = vector.shape_cast %19 : vector<1xf32> to vector<1x1x1x1xf32>
    %21 = vector.extract %20[0, 0, 0, 0] : f32 from vector<1x1x1x1xf32>
    %cst_13 = arith.constant 5.000000e-01 : f32
    %22 = arith.mulf %cst_13, %21 : f32
    %cst_14 = arith.constant 9.765625E-4 : f32
    %23 = arith.mulf %22, %cst_14 : f32
    %cst_15 = arith.constant 5.000000e-01 : f32
    %24 = vector.broadcast %cst_15 : f32 to vector<32x32xf32>
    %25 = arith.mulf %24, %15 : vector<32x32xf32>
    %c0_16 = arith.constant 0 : index
    %c0_17 = arith.constant 0 : index
    %26 = vector.load %arg2[%c0_16, %c0_17] : memref<32x32xf32, #tpu.memory_space<vmem>>, vector<32x32xf32>
    %cst_18 = arith.constant 5.000000e-01 : f32
    %27 = vector.broadcast %cst_18 : f32 to vector<32x32xf32>
    %28 = arith.mulf %27, %26 : vector<32x32xf32>
    %29 = arith.addf %25, %28 : vector<32x32xf32>
    %30 = arith.mulf %29, %29 : vector<32x32xf32>
    %cst_19 = arith.constant dense<0.000000e+00> : vector<32xf32>
    %31 = vector.multi_reduction <add>, %30, %cst_19 [1] : vector<32x32xf32> to vector<32xf32>
    %32 = vector.shape_cast %31 : vector<32xf32> to vector<32x1xf32>
    %33 = tpu.transpose %32, [1, 0] : vector<32x1xf32> -> vector<1x32xf32>
    %cst_20 = arith.constant dense<0.000000e+00> : vector<3x32xf32>
    %34 = vector.multi_reduction <add>, %13, %cst_20 [1] : vector<3x32x32xf32> to vector<3x32xf32>
    %35 = vector.shape_cast %34 : vector<3x32xf32> to vector<3x1x32xf32>
    %36 = math.rsqrt %35 : vector<3x1x32xf32>
    %37 = arith.mulf %35, %36 : vector<3x1x32xf32>
    %38 = tpu.transpose %36, [0, 2, 1] : vector<3x1x32xf32> -> vector<3x32x1xf32>
    %39 = vector.broadcast %38 : vector<3x32x1xf32> to vector<3x32x32xf32>
    %40 = arith.mulf %13, %39 : vector<3x32x32xf32>
    %41 = vector.broadcast %36 : vector<3x1x32xf32> to vector<3x32x32xf32>
    %42 = arith.mulf %40, %41 : vector<3x32x32xf32>
    %43 = vector.shape_cast %42 : vector<3x32x32xf32> to vector<96x32xf32>
    %cst_21 = arith.constant dense<0.000000e+00> : vector<96x32xf32>
    %44 = tpu.matmul %43, %29, %cst_21 {dimension_numbers = #tpu.dot_dimension_numbers<[1], [0], [0], [1], [0, 0, 1, 1], [], []>} : vector<96x32xf32>, vector<32x32xf32>, vector<96x32xf32> -> vector<96x32xf32>
    %45 = vector.shape_cast %44 : vector<96x32xf32> to vector<3x32x32xf32>
    %46 = vector.shape_cast %29 : vector<32x32xf32> to vector<1x32x32xf32>
    %47 = vector.broadcast %46 : vector<1x32x32xf32> to vector<3x32x32xf32>
    %48 = arith.mulf %47, %45 : vector<3x32x32xf32>
    %49 = vector.shape_cast %48 : vector<3x32x32xf32> to vector<1x3x32x32xf32>
    %cst_22 = arith.constant dense<0.000000e+00> : vector<1xf32>
    %50 = vector.multi_reduction <add>, %49, %cst_22 [1, 2, 3] : vector<1x3x32x32xf32> to vector<1xf32>
    %51 = vector.shape_cast %50 : vector<1xf32> to vector<1x1x1x1xf32>
    %52 = vector.extract %51[0, 0, 0, 0] : f32 from vector<1x1x1x1xf32>
    %cst_23 = arith.constant 2.000000e+00 : f32
    %53 = arith.mulf %cst_23, %52 : f32
    %54 = vector.shape_cast %33 : vector<1x32xf32> to vector<1x1x32xf32>
    %55 = vector.broadcast %54 : vector<1x1x32xf32> to vector<3x1x32xf32>
    %56 = arith.mulf %37, %55 : vector<3x1x32xf32>
    %57 = vector.shape_cast %56 : vector<3x1x32xf32> to vector<1x3x1x32xf32>
    %cst_24 = arith.constant dense<0.000000e+00> : vector<1xf32>
    %58 = vector.multi_reduction <add>, %57, %cst_24 [1, 2, 3] : vector<1x3x1x32xf32> to vector<1xf32>
    %59 = vector.shape_cast %58 : vector<1xf32> to vector<1x1x1x1xf32>
    %60 = vector.extract %59[0, 0, 0, 0] : f32 from vector<1x1x1x1xf32>
    %61 = arith.subf %60, %53 : f32
    %cst_25 = arith.constant 3.125000e-02 : f32
    %62 = arith.mulf %61, %cst_25 : f32
    %63 = arith.addf %23, %62 : f32
    %64 = vector.broadcast %63 : f32 to vector<1x128xf32>
    %c0_26 = arith.constant 0 : index
    %c0_27 = arith.constant 0 : index
    %65 = vector.load %arg5[%c0_26, %c0_27] : memref<1x128xf32, #tpu.memory_space<vmem>>, vector<1x128xf32>
    tpu.vector_store %arg5[%c0_26, %c0_27], %64 {strides = array<i32>} : memref<1x128xf32, #tpu.memory_space<vmem>>, vector<1x128xf32>,
    return
  }
}

</mosaic_0001>

<bundles_post_ra>
// kernel: tpu_custom_call.1
= control target key start
LH: loop header
LB: loop body
LE: loop exit
PB: predicated region body
PF: predicated region fallthrough
CT: control target
= control target key end

     0   :  { %11 = vsyncpa [#allocation3], 0  ;;  %s2260_s0 = inlined_call_operand.hbm [shape: f32[3,32,32], index: 0, kind: input, shape index: {}]   ;;  %s2261_s1 = inlined_call_operand.hbm [shape: f32[32,32], index: 1, kind: input, shape index: {}]   ;;  %s2262_s2 = inlined_call_operand.hbm [shape: f32[32,32], index: 2, kind: input, shape index: {}]   ;;  %s2263_s3 = inlined_call_operand.hbm [shape: f32[32,32], index: 3, kind: output, shape index: {0}]   ;;  %s2264_s4 = inlined_call_operand.hbm [shape: f32[3,32,32], index: 4, kind: output, shape index: {1}]   ;;  %s2265_s5 = inlined_call_operand.hbm [shape: f32[1,128], index: 5, kind: output, shape index: {2}]  }
   0x1   :  { %12 = vsyncpa [#allocation6], 0 }
   0x2   :  { %13 = vsyncpa [#allocation4], 0 }
   0x3   :  { %14 = vsyncpa [#allocation10], 0  ;;  %s1786_s18 = smov [#allocation5]   ;;  %s1787_s20 = smov [#allocation2]  }
   0x4   :  { %s32_s19 = sshll.u32 %s1786_s18, 4  ;;  %s20_s21 = sshll.u32 %s1787_s20, 4  ;;  %s33_s19 = int_to_ptr.vmem [resolvable:$true] %s32_s19  ;;  %s1825_s21 = int_to_ptr.vmem [resolvable:$true] %s20_s21 }
   0x5   :  { %s1646_s24 = scalar_lea.hbm %s2261_s1, 512 }
   0x6   :  { %p1647_p0 = scmp.ne.s32.totalorder %s2261_s1, %s1646_s24  ;;  %p1650_p1 = scmp.lt.u32.totalorder %s1646_s24, %s2261_s1 }
   0x8   :  { %p1652_p2 = pnand %p1650_p1, %p1647_p0 }
   0xa   :  { %1655 = shalt.err (!%p1652_p2)
}
   0xb   :  { %s1656_s29 = scalar_lea.vmem %s33_s19, 512  ;;  %p1661_p4 = scmp.lt.s32.totalorder %s33_s19, %s33_s19 }
   0xc   :  { %p1657_p3 = scmp.ne.s32.totalorder %s33_s19, %s1656_s29  ;;  %p1662_p5 = scmp.lt.s32.totalorder %s1656_s29, %s1656_s29 }
   0xe   :  { %p1663_p6 = por %p1662_p5, %p1661_p4 }
  0x10   :  { %p1664_p7 = pnand %p1663_p6, %p1657_p3 }
  0x12   :  { %1667 = shalt.err (!%p1664_p7)
}
  0x13   :  { %s1788_s30 = smov 128   ;;  %s1789_s6 = smov 8  }
  0x14   :  { %38 = dma.hbm_to_vmem [thread:$0]  %s2261_s1, 512, %s33_s19, [#allocation6], %s1788_s30, %s1788_s30, %s1789_s6  }
  0x15   :  { %s1668_s11 = scalar_lea.hbm %s2260_s0, 1536 }
  0x16   :  { %p1669_p8 = scmp.ne.s32.totalorder %s2260_s0, %s1668_s11  ;;  %p1672_p9 = scmp.lt.u32.totalorder %s1668_s11, %s2260_s0 }
  0x18   :  { %p1674_p10 = pnand %p1672_p9, %p1669_p8 }
  0x1a   :  { %1677 = shalt.err (!%p1674_p10)
}
  0x1b   :  { %s1678_s16 = scalar_lea.vmem %s1825_s21, 1536  ;;  %p1683_p12 = scmp.lt.s32.totalorder %s1825_s21, %s1825_s21 }
  0x1c   :  { %p1679_p11 = scmp.ne.s32.totalorder %s1825_s21, %s1678_s16  ;;  %p1684_p13 = scmp.lt.s32.totalorder %s1678_s16, %s1678_s16 }
  0x1e   :  { %p1685_p0 = por %p1684_p13, %p1683_p12 }
  0x20   :  { %p1686_p1 = pnand %p1685_p0, %p1679_p11 }
  0x22   :  { %1689 = shalt.err (!%p1686_p1)
}
  0x23   :  { %26 = dma.hbm_to_vmem [thread:$0]  %s2260_s0, 1536, %s1825_s21, [#allocation3], %s1788_s30, %s1788_s30, %s1789_s6  }
  0x24   :  { %s1790_s18 = smov [#allocation7]   ;;  %s1690_s23 = scalar_lea.hbm %s2262_s2, 512 }
  0x25   :  { %s44_s19 = sshll.u32 %s1790_s18, 4  ;;  %p1691_p2 = scmp.ne.s32.totalorder %s2262_s2, %s1690_s23  ;;  %s45_s19 = int_to_ptr.vmem [resolvable:$true] %s44_s19 }
  0x26   :  { %p1694_p3 = scmp.lt.u32.totalorder %s1690_s23, %s2262_s2 }
  0x28   :  { %p1696_p4 = pnand %p1694_p3, %p1691_p2 }
  0x2a   :  { %1699 = shalt.err (!%p1696_p4)
}
  0x2b   :  { %s1700_s28 = scalar_lea.vmem %s45_s19, 512  ;;  %p1705_p6 = scmp.lt.s32.totalorder %s45_s19, %s45_s19 }
  0x2c   :  { %p1701_p5 = scmp.ne.s32.totalorder %s45_s19, %s1700_s28  ;;  %p1706_p7 = scmp.lt.s32.totalorder %s1700_s28, %s1700_s28 }
  0x2e   :  { %p1707_p8 = por %p1706_p7, %p1705_p6 }
  0x30   :  { %p1708_p9 = pnand %p1707_p8, %p1701_p5 }
  0x32   :  { %1711 = shalt.err (!%p1708_p9)
}
  0x33   :  { %50 = dma.hbm_to_vmem [thread:$0]  %s2262_s2, 512, %s45_s19, [#allocation6], %s1788_s30, %s1788_s30, %s1789_s6  }
  0x34   :  { %1778 = dma.done.wait [#allocation3], 1536  }
  0x35   :  { %1779 = vsyncadd [#allocation3], 4294965760 }
  0x36   :  { %1780 = dma.done.wait [#allocation6], 1024  }
  0x37   :  { %1781 = vsyncadd [#allocation6], 4294966272  ;;  %vm76_vm0 = vcmask 261120   ;;  %v1877_v0 = vld [vmem:[#allocation2] sm:$0xff]  ;;  %v1879_v1 = vld [vmem:[#allocation2 + $0x10] sm:$0xff]  ;;  %v233_v54 = vlaneseq  ;;  %vm1277_vm2 = vcmask 253952  }
  0x38   :  { %v1881_v2 = vld [vmem:[#allocation2 + $0x8] sm:$0xff]  ;;  %v77_v3 = vsel %vm76_vm0, %v1877_v0, 0.0  ;;  %v83_v4 = vsel %vm76_vm0, %v1879_v1, 0.0  ;;  %v1887_v5 = vld [vmem:[#allocation2 + $0x18] sm:$0xff]  ;;  %v1893_v8 = vld [vmem:[#allocation2 + $0x20] sm:$0xff]  ;;  %s1792_s2 = smov [#allocation9]  }
  0x39   :  { %78 = vadd.xlane.f32.xlu0 %v77_v3  ;;  %84 = vadd.xlane.f32.xlu1 %v83_v4  ;;  %v80_v6 = vsel %vm76_vm0, %v1881_v2, 0.0  ;;  %v86_v7 = vsel %vm76_vm0, %v1887_v5, 0.0  ;;  %v1895_v9 = vld [vmem:[#allocation2 + $0x28] sm:$0xff]  ;;  %v89_v10 = vsel %vm76_vm0, %v1893_v8, 0.0  ;;  %v1901_v12 = vld [vmem:[#allocation2 + $0x30] sm:$0xff]  ;;  %v1903_v13 = vld [vmem:[#allocation2 + $0x38] sm:$0xff] }
  0x3a   :  { %v92_v11 = vsel %vm76_vm0, %v1895_v9, 0.0  ;;  %v95_v14 = vsel %vm76_vm0, %v1901_v12, 0.0  ;;  %v98_v15 = vsel %vm76_vm0, %v1903_v13, 0.0  ;;  %v1909_v16 = vld [vmem:[#allocation2 + $0x40] sm:$0xff]  ;;  %v1911_v17 = vld [vmem:[#allocation2 + $0x48] sm:$0xff]  ;;  %v1917_v20 = vld [vmem:[#allocation2 + $0x50] sm:$0xff] }
  0x3b   :  { %v101_v18 = vsel %vm76_vm0, %v1909_v16, 0.0  ;;  %v104_v19 = vsel %vm76_vm0, %v1911_v17, 0.0  ;;  %v1919_v21 = vld [vmem:[#allocation2 + $0x58] sm:$0xff]  ;;  %v107_v22 = vsel %vm76_vm0, %v1917_v20, 0.0  ;;  %v72_v24 = vld [vmem:[#allocation5] sm:$0xff]  ;;  %v73_v25 = vld [vmem:[#allocation5 + $0x8] sm:$0xff] }
  0x3c   :  { %v110_v23 = vsel %vm76_vm0, %v1919_v21, 0.0  ;;  %v1542_v26 = vpack.c.bf16 %v73_v25, %v72_v24  ;;  %v74_v34 = vld [vmem:[#allocation5 + $0x10] sm:$0xff]  ;;  %v75_v35 = vld [vmem:[#allocation5 + $0x18] sm:$0xff]  ;;  %v234_v55 = vshrl.u32 %v233_v54, 7  ;;  %vm1931_vm1 = vmpackc.low %vm76_vm0, %vm76_vm0  ;;  %s1314_s29 = sshll.u32 %s1792_s2, 4  ;;  %s1793_s7 = smov [#allocation8]   ;;  %s1315_s29 = int_to_ptr.vmem [resolvable:$true] %s1314_s29 }
  0x3d   :  { %81 = vadd.xlane.f32.xlu0 %v80_v6  ;;  %87 = vadd.xlane.f32.xlu1 %v86_v7  ;;  %v1546_v38 = vpack.c.bf16 %v75_v35, %v74_v34  ;;  %s1302_s8 = sshll.u32 %s1793_s7, 4  ;;  %s1712_s9 = scalar_lea.vmem %s1315_s29, 1536  ;;  %s2211_s8 = int_to_ptr.vmem [resolvable:$true] %s1302_s8 }
  0x3e   :  { %1543 = vmatprep.subr.bf16.mxu0 %v1542_v26  ;;  %v235_v56 = vsub.s32 0, %v234_v55  ;;  %p1713_p10 = scmp.ne.s32.totalorder %s1315_s29, %s1712_s9  ;;  %p1717_p11 = scmp.lt.s32.totalorder %s1315_s29, %s1315_s29 }
  0x3f   :  { %1545 = vmatpush3.bf16.msra.mxu0 %v1542_v26  ;;  %p1718_p12 = scmp.lt.s32.totalorder %s1712_s9, %s1712_s9 }
  0x40   :  { %1547 = vmatprep.subr.bf16.mxu0 %v1546_v38 }
  0x41   :  { %90 = vadd.xlane.f32.xlu0 %v89_v10  ;;  %93 = vadd.xlane.f32.xlu1 %v92_v11  ;;  %p1719_p13 = por %p1718_p12, %p1717_p11 }
  0x43   :  { %1549 = vmatpush3.bf16.msra.mxu0 %v1546_v38  ;;  %p1720_p0 = pnand %p1719_p13, %p1713_p10 }
  0x45   :  { %96 = vadd.xlane.f32.xlu0 %v95_v14  ;;  %99 = vadd.xlane.f32.xlu1 %v98_v15 }
  0x49   :  { %102 = vadd.xlane.f32.xlu0 %v101_v18  ;;  %105 = vadd.xlane.f32.xlu1 %v104_v19 }
  0x4d   :  { %108 = vadd.xlane.f32.xlu0 %v107_v22  ;;  %111 = vadd.xlane.f32.xlu1 %v110_v23 }
  0xc6   :  { %v79_v27 = vpop.xlane.xlu0 %78  ;;  %v85_v28 = vpop.xlane.xlu1 %84 }
  0xc7   :  { %1616 = vrsqrt.f32 %v79_v27 }
  0xca   :  { %v82_v29 = vpop.xlane.xlu0 %81  ;;  %v88_v30 = vpop.xlane.xlu1 %87 }
  0xcb   :  { %1618 = vrsqrt.f32 %v82_v29 }
  0xcc   :  { %1620 = vrsqrt.f32 %v85_v28 }
  0xce   :  { %v91_v31 = vpop.xlane.xlu0 %90  ;;  %v94_v32 = vpop.xlane.xlu1 %93 }
  0xcf   :  { %1622 = vrsqrt.f32 %v91_v31 }
  0xd0   :  { %1624 = vrsqrt.f32 %v88_v30 }
  0xd1   :  { %v1617_v33 = vpop.eup %1616  ;;  %1626 = vrsqrt.f32 %v94_v32 }
  0xd2   :  { %137 = vxpose.xlu0.b32.start [1/4] (short) (narrow) %v1617_v33, 8  ;;  %v97_v36 = vpop.xlane.xlu0 %96  ;;  %v100_v37 = vpop.xlane.xlu1 %99  ;;  %v125_v58 = vmul.f32 %v1617_v33, %v1877_v0 }
  0xd3   :  { %1628 = vrsqrt.f32 %v97_v36 }
  0xd5   :  { %v1619_v39 = vpop.eup %1618 }
  0xd6   :  { %138 = vxpose.xlu0.b32.cont [2/4] (short) (narrow) %v1619_v39, 8  ;;  %v103_v40 = vpop.xlane.xlu0 %102  ;;  %v106_v41 = vpop.xlane.xlu1 %105  ;;  %v126_v61 = vmul.f32 %v1619_v39, %v1881_v2 }
  0xd7   :  { %v1621_v42 = vpop.eup %1620  ;;  %1630 = vrsqrt.f32 %v103_v40 }
  0xd8   :  { %1632 = vrsqrt.f32 %v100_v37  ;;  %v127_v62 = vmul.f32 %v1621_v42, %v1879_v1 }
  0xd9   :  { %v1623_v43 = vpop.eup %1622  ;;  %1634 = vrsqrt.f32 %v106_v41 }
  0xda   :  { %v1625_v44 = vpop.eup %1624  ;;  %139 = vxpose.xlu0.b32.cont [3/4] (short) (narrow) %v1621_v42, 8  ;;  %169 = vxpose.xlu1.b32.start [1/4] (short) (narrow) %v1623_v43, 8  ;;  %v109_v45 = vpop.xlane.xlu0 %108  ;;  %v129_v2 = vmul.f32 %v1623_v43, %v1893_v8 }
  0xdb   :  { %v1627_v46 = vpop.eup %1626  ;;  %1636 = vrsqrt.f32 %v109_v45  ;;  %v112_v47 = vpop.xlane.xlu1 %111  ;;  %v128_v59 = vmul.f32 %v1625_v44, %v1887_v5 }
  0xdc   :  { %1638 = vrsqrt.f32 %v112_v47  ;;  %v130_v14 = vmul.f32 %v1627_v46, %v1895_v9 }
  0xdd   :  { %v1629_v48 = vpop.eup %1628 }
  0xde   :  { %140 = vxpose.xlu0.b32.end [4/4] (short) (narrow) %v1625_v44, 8  ;;  %170 = vxpose.xlu1.b32.cont [2/4] (short) (narrow) %v1627_v46, 8  ;;  %v131_v15 = vmul.f32 %v1629_v48, %v1901_v12 }
  0xe1   :  { %v1631_v49 = vpop.eup %1630 }
  0xe2   :  { %v1633_v50 = vpop.eup %1632  ;;  %171 = vxpose.xlu1.b32.cont [3/4] (short) (narrow) %v1629_v48, 8  ;;  %201 = vxpose.xlu0.b32.start [1/4] (short) (narrow) %v1631_v49, 8  ;;  %v133_v12 = vmul.f32 %v1631_v49, %v1909_v16 }
  0xe3   :  { %v1635_v51 = vpop.eup %1634  ;;  %v132_v5 = vmul.f32 %v1633_v50, %v1903_v13 }
  0xe4   :  { %v134_v25 = vmul.f32 %v1635_v51, %v1911_v17 }
  0xe5   :  { %v1637_v52 = vpop.eup %1636 }
  0xe6   :  { %172 = vxpose.xlu1.b32.end [4/4] (short) (narrow) %v1633_v50, 8  ;;  %202 = vxpose.xlu0.b32.cont [2/4] (short) (narrow) %v1635_v51, 8  ;;  %v1639_v53 = vpop.eup %1638  ;;  %v135_v26 = vmul.f32 %v1637_v52, %v1917_v20 }
  0xe7   :  { %v136_v27 = vmul.f32 %v1639_v53, %v1919_v21 }
  0xea   :  { %203 = vxpose.xlu0.b32.cont [3/4] (short) (narrow) %v1637_v52, 8 }
  0xee   :  { %204 = vxpose.xlu0.b32.end [4/4] (short) (narrow) %v1639_v53, 8 }
 0x152   :  { %v153_v57 = vpop.trf.xlu0 }
 0x153   :  { %v236_v60 = vrot.slane %v153_v57, %v235_v56 }
 0x155   :  { %v248_v63 = vmul.f32 %v236_v60, %v128_v59  ;;  %v245_v3 = vmul.f32 %v236_v60, %v125_v58  ;;  %v246_v4 = vmul.f32 %v236_v60, %v126_v61  ;;  %v247_v6 = vmul.f32 %v236_v60, %v127_v62 }
 0x157   :  { %1456 = vmatprep.mubr.msk.f32.mxu0 %vm76_vm0, %v245_v3  ;;  %v1550_v0 = vpack.c.bf16 %v246_v4, %v245_v3  ;;  %v1556_v10 = vpack.c.bf16 %v248_v63, %v247_v6 }
 0x158   :  { %1457 = vmatmul.mubr.msk.f32.vlgmr.msra.gmra.mrb[0].mxu0 %vm76_vm0, %v246_v4 }
 0x159   :  { %1459 = vmatprep.mubr.msk.f32.mxu0 %vm76_vm0, %v247_v6  ;;  %1552 = vmatprep.subr.msk.bf16.mxu1 %vm1931_vm1, %v1550_v0 }
 0x15a   :  { %v185_v1 = vpop.trf.xlu1  ;;  %1555 = vmatpush3.bf16.xpose.msk.msra.mxu1 %vm1931_vm1, %v1550_v0 }
 0x15b   :  { %v240_v11 = vrot.slane %v185_v1, %v235_v56  ;;  %1558 = vmatprep.subr.msk.bf16.mxu1 %vm1931_vm1, %v1556_v10 }
 0x15c   :  { %1460 = vmatmul.mubr.msk.f32.gmra.mrb[2].mxu0 %vm76_vm0, %v248_v63 }
 0x15d   :  { %v252_v18 = vmul.f32 %v240_v11, %v132_v5  ;;  %v249_v19 = vmul.f32 %v240_v11, %v129_v2  ;;  %v250_v22 = vmul.f32 %v240_v11, %v130_v14  ;;  %v251_v23 = vmul.f32 %v240_v11, %v131_v15 }
 0x15f   :  { %1462 = vmatprep.mubr.msk.f32.mxu0 %vm76_vm0, %v249_v19  ;;  %v1562_v24 = vpack.c.bf16 %v250_v22, %v249_v19  ;;  %v1568_v8 = vpack.c.bf16 %v252_v18, %v251_v23 }
 0x160   :  { %1463 = vmatmul.mubr.msk.f32.gmra.mrb[4].mxu0 %vm76_vm0, %v250_v22 }
 0x161   :  { %1465 = vmatprep.mubr.msk.f32.mxu0 %vm76_vm0, %v251_v23  ;;  %1564 = vmatprep.subr.msk.bf16.mxu0 %vm1931_vm1, %v1562_v24 }
 0x162   :  { %1561 = vmatpush3.bf16.xpose.msk.msra.mxu1 %vm1931_vm1, %v1556_v10  ;;  %1567 = vmatpush3.bf16.xpose.msk.msra.mxu0 %vm1931_vm1, %v1562_v24  ;;  %v217_v9 = vpop.trf.xlu0 }
 0x163   :  { %v244_v13 = vrot.slane %v217_v9, %v235_v56  ;;  %1570 = vmatprep.subr.msk.bf16.mxu0 %vm1931_vm1, %v1568_v8  ;;  %v795_v9 = vld [vmem:[#allocation7] sm:$0xff] }
 0x164   :  { %1466 = vmatmul.mubr.msk.f32.gmra.mrb[6].mxu0 %vm76_vm0, %v252_v18  ;;  %v796_v18 = vld [vmem:[#allocation7 + $0x8] sm:$0xff] }
 0x165   :  { %v253_v28 = vmul.f32 %v244_v13, %v133_v12  ;;  %v254_v29 = vmul.f32 %v244_v13, %v134_v25  ;;  %v255_v30 = vmul.f32 %v244_v13, %v135_v26  ;;  %v256_v31 = vmul.f32 %v244_v13, %v136_v27  ;;  %v798_v12 = vld [vmem:[#allocation7 + $0x18] sm:$0xff] }
 0x167   :  { %1468 = vmatprep.mubr.msk.f32.mxu0 %vm76_vm0, %v253_v28  ;;  %v1574_v32 = vpack.c.bf16 %v254_v29, %v253_v28  ;;  %v1580_v16 = vpack.c.bf16 %v256_v31, %v255_v30 }
 0x168   :  { %1469 = vmatmul.mubr.msk.f32.gmra.mrb[8].mxu0 %vm76_vm0, %v254_v29 }
 0x169   :  { %1471 = vmatprep.mubr.msk.f32.mxu0 %vm76_vm0, %v255_v30  ;;  %1576 = vmatprep.subr.msk.bf16.mxu1 %vm1931_vm1, %v1574_v32 }
 0x16a   :  { %1573 = vmatpush3.bf16.xpose.msk.msra.mxu0 %vm1931_vm1, %v1568_v8 }
 0x16c   :  { %1472 = vmatmul.mubr.msk.f32.gmra.mrb[10].mxu0 %vm76_vm0, %v256_v31  ;;  %v800_v31 = vmul.f32 0.5, %v796_v18 }
 0x22b   :  { %v1458_v17 = vpop.f32.mrb[0].mxu0 }
 0x22c   :  { %v359_v20 = vpop.f32.mrb[1].mxu0 }
 0x22d   :  { %1482 = vmatprep.mubr.msk.f32.mxu1 %vm76_vm0, %v359_v20  ;;  %v799_v20 = vmul.f32 0.5, %v795_v9 }
 0x22e   :  { %1483 = vmatmul.mubr.msk.f32.vlgmr.msra.gmra.mrb[0].mxu1 %vm76_vm0, %v1458_v17 }
 0x22f   :  { %1579 = vmatpush3.bf16.xpose.msk.msra.mxu1 %vm1931_vm1, %v1574_v32  ;;  %v1461_v21 = vpop.f32.mrb[2].mxu0 }
 0x230   :  { %1582 = vmatprep.subr.msk.bf16.mxu1 %vm1931_vm1, %v1580_v16  ;;  %v369_v33 = vpop.f32.mrb[3].mxu0 }
 0x231   :  { %1485 = vmatprep.mubr.msk.f32.mxu1 %vm76_vm0, %v369_v33 }
 0x232   :  { %1486 = vmatmul.mubr.msk.f32.gmra.mrb[2].mxu1 %vm76_vm0, %v1461_v21  ;;  %v802_v21 = vmul.f32 0.5, %v798_v12 }
 0x233   :  { %v1464_v34 = vpop.f32.mrb[4].mxu0 }
 0x234   :  { %v379_v35 = vpop.f32.mrb[5].mxu0 }
 0x235   :  { %1496 = vmatprep.mubr.msk.f32.mxu0 %vm76_vm0, %v379_v35 }
 0x236   :  { %1497 = vmatmul.mubr.msk.f32.vlgmr.msra.gmra.mrb[12].mxu0 %vm76_vm0, %v1464_v34 }
 0x237   :  { %1585 = vmatpush3.bf16.xpose.msk.msra.mxu1 %vm1931_vm1, %v1580_v16  ;;  %v1467_v36 = vpop.f32.mrb[6].mxu0 }
 0x238   :  { %v389_v37 = vpop.f32.mrb[7].mxu0 }
 0x239   :  { %1499 = vmatprep.mubr.msk.f32.mxu0 %vm76_vm0, %v389_v37 }
 0x23a   :  { %1500 = vmatmul.mubr.msk.f32.gmra.mrb[14].mxu0 %vm76_vm0, %v1467_v36 }
 0x23b   :  { %v1470_v38 = vpop.f32.mrb[8].mxu0 }
 0x23c   :  { %v399_v39 = vpop.f32.mrb[9].mxu0 }
 0x23d   :  { %1510 = vmatprep.mubr.msk.f32.mxu1 %vm76_vm0, %v399_v39 }
 0x23e   :  { %1511 = vmatmul.mubr.msk.f32.vlgmr.msra.gmra.mrb[4].mxu1 %vm76_vm0, %v1470_v38  ;;  %v797_v38 = vld [vmem:[#allocation7 + $0x10] sm:$0xff] }
 0x23f   :  { %v1473_v40 = vpop.f32.mrb[10].mxu0 }
 0x240   :  { %v409_v41 = vpop.f32.mrb[11].mxu0 }
 0x241   :  { %1513 = vmatprep.mubr.msk.f32.mxu1 %vm76_vm0, %v409_v41 }
 0x242   :  { %1514 = vmatmul.mubr.msk.f32.gmra.mrb[6].mxu1 %vm76_vm0, %v1473_v40 }
 0x301   :  { %v1991_v42 = vpop.f32.mrb[0].mxu1 }
 0x302   :  { %710 = vst.msk [vmem:[#allocation9 + $0x8] sm:$0xff] %vm76_vm0, %v1991_v42  ;;  %v726_v43 = vsel %vm76_vm0, %v1991_v42, 0.0  ;;  %v746_v44 = vmul.f32 %v1991_v42, %v1991_v42  ;;  %v1999_v45 = vpop.f32.mrb[1].mxu1 }
 0x303   :  { %709 = vst.msk [vmem:[#allocation9] sm:$0xff] %vm76_vm0, %v1999_v45  ;;  %v721_v46 = vsel %vm76_vm0, %v1999_v45, 0.0  ;;  %v745_v47 = vmul.f32 %v1999_v45, %v1999_v45 }
 0x304   :  { %v758_v48 = vsel %vm76_vm0, %v746_v44, 0.0  ;;  %v855_v49 = vadd.f32 %v726_v43, %v721_v46 }
 0x305   :  { %v757_v50 = vsel %vm76_vm0, %v745_v47, 0.0  ;;  %v2009_v51 = vpop.f32.mrb[2].mxu1 }
 0x306   :  { %v759_v52 = vadd.f32 %v758_v48, %v757_v50  ;;  %712 = vst.msk [vmem:[#allocation9 + $0x18] sm:$0xff] %vm76_vm0, %v2009_v51  ;;  %v748_v53 = vmul.f32 %v2009_v51, %v2009_v51  ;;  %v2015_v54 = vpop.f32.mrb[3].mxu1  ;;  %v736_v58 = vsel %vm76_vm0, %v2009_v51, 0.0 }
 0x307   :  { %711 = vst.msk [vmem:[#allocation9 + $0x10] sm:$0xff] %vm76_vm0, %v2015_v54  ;;  %v731_v55 = vsel %vm76_vm0, %v2015_v54, 0.0  ;;  %v747_v56 = vmul.f32 %v2015_v54, %v2015_v54 }
 0x308   :  { %v856_v57 = vadd.f32 %v855_v49, %v731_v55  ;;  %v762_v61 = vsel %vm76_vm0, %v748_v53, 0.0 }
 0x309   :  { %v760_v59 = vsel %vm76_vm0, %v747_v56, 0.0  ;;  %v2026_v60 = vpop.f32.mrb[12].mxu0 }
 0x30a   :  { %v761_v62 = vadd.f32 %v760_v59, %v759_v52  ;;  %v857_v63 = vadd.f32 %v856_v57, %v736_v58  ;;  %714 = vst.msk [vmem:[#allocation9 + $0x28] sm:$0xff] %vm76_vm0, %v2026_v60  ;;  %v727_v3 = vsel %vm76_vm0, %v2026_v60, 0.0  ;;  %v2033_v4 = vpop.f32.mrb[13].mxu0  ;;  %v750_v7 = vmul.f32 %v2026_v60, %v2026_v60 }
 0x30b   :  { %v728_v6 = vadd.f32 %v727_v3, %v726_v43  ;;  %713 = vst.msk [vmem:[#allocation9 + $0x20] sm:$0xff] %vm76_vm0, %v2033_v4  ;;  %v722_v0 = vsel %vm76_vm0, %v2033_v4, 0.0  ;;  %v749_v10 = vmul.f32 %v2033_v4, %v2033_v4 }
 0x30c   :  { %v858_v1 = vrot.slane %v857_v63, 4  ;;  %v723_v2 = vadd.f32 %v722_v0, %v721_v46  ;;  %v763_v5 = vadd.f32 %v762_v61, %v761_v62  ;;  %v864_v14 = vadd.f32 %v727_v3, %v722_v0 }
 0x30d   :  { %v764_v11 = vsel %vm76_vm0, %v749_v10, 0.0  ;;  %v2044_v15 = vpop.f32.mrb[14].mxu0  ;;  %v766_v13 = vsel %vm76_vm0, %v750_v7, 0.0 }
 0x30e   :  { %v859_v19 = vadd.f32 %v858_v1, %v857_v63  ;;  %v765_v22 = vadd.f32 %v764_v11, %v763_v5  ;;  %716 = vst.msk [vmem:[#allocation9 + $0x38] sm:$0xff] %vm76_vm0, %v2044_v15  ;;  %v737_v23 = vsel %vm76_vm0, %v2044_v15, 0.0  ;;  %v752_v24 = vmul.f32 %v2044_v15, %v2044_v15  ;;  %v2052_v8 = vpop.f32.mrb[15].mxu0 }
 0x30f   :  { %v738_v25 = vadd.f32 %v737_v23, %v736_v58  ;;  %715 = vst.msk [vmem:[#allocation9 + $0x30] sm:$0xff] %vm76_vm0, %v2052_v8  ;;  %v732_v26 = vsel %vm76_vm0, %v2052_v8, 0.0  ;;  %v751_v27 = vmul.f32 %v2052_v8, %v2052_v8 }
 0x310   :  { %v860_v28 = vrot.slane %v859_v19, 2  ;;  %v733_v29 = vadd.f32 %v732_v26, %v731_v55  ;;  %v767_v30 = vadd.f32 %v766_v13, %v765_v22  ;;  %v865_v16 = vadd.f32 %v864_v14, %v732_v26 }
 0x311   :  { %v768_v32 = vsel %vm76_vm0, %v751_v27, 0.0  ;;  %v2062_v17 = vpop.f32.mrb[4].mxu1  ;;  %v770_v34 = vsel %vm76_vm0, %v752_v24, 0.0  ;;  %v801_v55 = vmul.f32 0.5, %v797_v38 }
 0x312   :  { %v861_v33 = vadd.f32 %v860_v28, %v859_v19  ;;  %v769_v35 = vadd.f32 %v768_v32, %v767_v30  ;;  %718 = vst.msk [vmem:[#allocation9 + $0x48] sm:$0xff] %vm76_vm0, %v2062_v17  ;;  %v729_v36 = vsel %vm76_vm0, %v2062_v17, 0.0  ;;  %v2069_v37 = vpop.f32.mrb[5].mxu1  ;;  %v866_v39 = vadd.f32 %v865_v16, %v737_v23 }
 0x313   :  { %v730_v40 = vadd.f32 %v729_v36, %v728_v6  ;;  %717 = vst.msk [vmem:[#allocation9 + $0x40] sm:$0xff] %vm76_vm0, %v2069_v37  ;;  %v724_v41 = vsel %vm76_vm0, %v2069_v37, 0.0  ;;  %v753_v43 = vmul.f32 %v2069_v37, %v2069_v37  ;;  %v754_v50 = vmul.f32 %v2062_v17, %v2062_v17 }
 0x314   :  { %v862_v44 = vrot.slane %v861_v33, 1  ;;  %v725_v46 = vadd.f32 %v724_v41, %v723_v2  ;;  %v873_v47 = vadd.f32 %v729_v36, %v724_v41  ;;  %v771_v48 = vadd.f32 %v770_v34, %v769_v35 }
 0x315   :  { %v867_v49 = vrot.slane %v866_v39, 4  ;;  %v792_v52 = vmul.f32 0.5, %v730_v40  ;;  %742 = vst.msk [vmem:[#allocation8 + $0x8] sm:$0xff] %vm76_vm0, %v730_v40  ;;  %v2080_v53 = vpop.f32.mrb[6].mxu1  ;;  %v772_v57 = vsel %vm76_vm0, %v753_v43, 0.0  ;;  %v774_v19 = vsel %vm76_vm0, %v754_v50, 0.0 }
 0x316   :  { %v2082_v56 = vadd.f32 %v862_v44, %v861_v33  ;;  %v791_v58 = vmul.f32 0.5, %v725_v46  ;;  %741 = vst.msk [vmem:[#allocation8] sm:$0xff] %vm76_vm0, %v725_v46  ;;  %720 = vst.msk [vmem:[#allocation9 + $0x58] sm:$0xff] %vm76_vm0, %v2080_v53  ;;  %v739_v59 = vsel %vm76_vm0, %v2080_v53, 0.0  ;;  %v2090_v61 = vpop.f32.mrb[7].mxu1  ;;  %v773_v18 = vadd.f32 %v772_v57, %v771_v48 }
 0x317   :  { %v868_v62 = vadd.f32 %v867_v49, %v866_v39  ;;  %v2092_v63 = vadd.f32 %v800_v31, %v792_v52  ;;  %v740_v3 = vadd.f32 %v739_v59, %v738_v25  ;;  %719 = vst.msk [vmem:[#allocation9 + $0x50] sm:$0xff] %vm76_vm0, %v2090_v61  ;;  %v734_v6 = vsel %vm76_vm0, %v2090_v61, 0.0 }
 0x318   :  { %1640 = vrsqrt.f32 %v2082_v56  ;;  %v2099_v7 = vadd.f32 %v799_v20, %v791_v58  ;;  %v735_v0 = vadd.f32 %v734_v6, %v733_v29  ;;  %v755_v10 = vmul.f32 %v2090_v61, %v2090_v61 }
 0x319   :  { %v869_v1 = vrot.slane %v868_v62, 2  ;;  %v794_v2 = vmul.f32 0.5, %v740_v3  ;;  %744 = vst.msk [vmem:[#allocation8 + $0x18] sm:$0xff] %vm76_vm0, %v740_v3  ;;  %v874_v5 = vadd.f32 %v873_v47, %v734_v6  ;;  %v756_v9 = vmul.f32 %v2080_v53, %v2080_v53 }
 0x31a   :  { %v793_v11 = vmul.f32 0.5, %v735_v0  ;;  %743 = vst.msk [vmem:[#allocation8 + $0x10] sm:$0xff] %vm76_vm0, %v735_v0  ;;  %v1586_v14 = vpack.c.bf16 %v2092_v63, %v2099_v7  ;;  %v775_v13 = vadd.f32 %v774_v19, %v773_v18  ;;  %v776_v25 = vsel %vm76_vm0, %v755_v10, 0.0 }
 0x31b   :  { %v870_v22 = vadd.f32 %v869_v1, %v868_v62  ;;  %v2108_v23 = vadd.f32 %v802_v21, %v794_v2  ;;  %v875_v24 = vadd.f32 %v874_v5, %v739_v59  ;;  %v778_v31 = vsel %vm76_vm0, %v756_v9, 0.0 }
 0x31c   :  { %v2112_v12 = vadd.f32 %v801_v55, %v793_v11  ;;  %1587 = vmatprep.subr.bf16.mxu0 %v1586_v14  ;;  %1594 = vmatprep.subr.bf16.mxu1 %v1586_v14  ;;  %v777_v29 = vadd.f32 %v776_v25, %v775_v13  ;;  %v1791_v39 = vmov 0   ;;  %v807_v58 = vmul.f32 %v2099_v7, %v2099_v7 }
 0x31d   :  { %v871_v26 = vrot.slane %v870_v22, 1  ;;  %v876_v27 = vrot.slane %v875_v24, 4  ;;  %1589 = vmatpush3.bf16.msra.mxu0 %v1586_v14  ;;  %1596 = vmatpush3.bf16.msra.mxu1 %v1586_v14  ;;  %v810_v6 = vmul.f32 %v2108_v23, %v2108_v23  ;;  %v808_v0 = vmul.f32 %v2092_v63, %v2092_v63 }
 0x31e   :  { %v1590_v28 = vpack.c.bf16 %v2108_v23, %v2112_v12  ;;  %v779_v32 = vadd.f32 %v778_v31, %v777_v29  ;;  %v811_v59 = vsel %vm76_vm0, %v807_v58, 0.0  ;;  %v809_v62 = vmul.f32 %v2112_v12, %v2112_v12 }
 0x31f   :  { %v877_v30 = vadd.f32 %v876_v27, %v875_v24  ;;  %v2118_v16 = vadd.f32 %v871_v26, %v870_v22  ;;  %v820_v10 = vsel %vm76_vm0, %v810_v6, 0.0  ;;  %v814_v1 = vsel %vm76_vm0, %v808_v0, 0.0 }
 0x320   :  { %1591 = vmatprep.subr.bf16.mxu0 %v1590_v28  ;;  %1595 = vmatprep.subr.bf16.mxu1 %v1590_v28  ;;  %v817_v3 = vsel %vm76_vm0, %v809_v62, 0.0 }
 0x321   :  { %v878_v20 = vrot.slane %v877_v30, 2  ;;  %1593 = vmatpush3.bf16.msra.mxu0 %v1590_v28  ;;  %1597 = vmatpush3.bf16.msra.mxu1 %v1590_v28  ;;  %1642 = vrsqrt.f32 %v2118_v16 }
 0x322   :  { %v2120_v21 = vpop.eup %1640 }
 0x323   :  { %v879_v33 = vadd.f32 %v878_v20, %v877_v30  ;;  %888 = vxpose.xlu1.b32.start.end [1/1] (short) (narrow) %v2120_v21, 32 }
 0x325   :  { %v880_v34 = vrot.slane %v879_v33, 1 }
 0x327   :  { %v2124_v35 = vadd.f32 %v880_v34, %v879_v33 }
 0x329   :  { %1644 = vrsqrt.f32 %v2124_v35 }
 0x32b   :  { %v2127_v36 = vpop.eup %1642 }
 0x32c   :  { %v886_v62 = vmul.f32 %v2127_v36, %v2118_v16 }
 0x330   :  { %920 = vxpose.xlu1.b32.start.end [1/1] (short) (narrow) %v2127_v36, 32 }
 0x333   :  { %v2130_v38 = vpop.eup %1644 }
 0x334   :  { %952 = vxpose.xlu0.b32.start.end [1/1] (short) (narrow) %v2130_v38, 32 }
 0x34e   :  { %1615 = vset.pattern.permute.xlu1 %v1791_v39 }
 0x35d   :  { %1614 = vset.pattern.permute.xlu0 %v1791_v39 }
 0x3a3   :  { %v904_v40 = vpop.trf.xlu1 }
 0x3a4   :  { %986 = vperm.xlu0 %1614, %v904_v40  }
 0x3a7   :  { %v905_v41 = vpop.trf.xlu1 }
 0x3a8   :  { %991 = vperm.xlu1 %1615, %v905_v41  }
 0x3ab   :  { %v906_v43 = vpop.trf.xlu1 }
 0x3ac   :  { %996 = vperm.xlu1 %1615, %v906_v43  }
 0x3af   :  { %v907_v44 = vpop.trf.xlu1 }
 0x3b0   :  { %1001 = vperm.xlu1 %1615, %v907_v44  }
 0x3b3   :  { %v936_v46 = vpop.trf.xlu1 }
 0x3b4   :  { %1006 = vperm.xlu0 %1614, %v936_v46   ;;  %v968_v47 = vpop.trf.xlu0 }
 0x3b7   :  { %v937_v48 = vpop.trf.xlu1 }
 0x3b8   :  { %1011 = vperm.xlu1 %1615, %v937_v48   ;;  %v969_v49 = vpop.trf.xlu0 }
 0x3bb   :  { %v938_v50 = vpop.trf.xlu1 }
 0x3bc   :  { %1016 = vperm.xlu0 %1614, %v938_v50   ;;  %v970_v55 = vpop.trf.xlu0 }
 0x3bf   :  { %v939_v52 = vpop.trf.xlu1 }
 0x3c0   :  { %1026 = vperm.xlu0 %1614, %v968_v47   ;;  %1021 = vperm.xlu1 %1615, %v939_v52   ;;  %v971_v57 = vpop.trf.xlu0 }
 0x3c4   :  { %1036 = vperm.xlu0 %1614, %v970_v55   ;;  %1031 = vperm.xlu1 %1615, %v969_v49  }
 0x3c8   :  { %1041 = vperm.xlu1 %1615, %v971_v57  }
 0x3e3   :  { %812 = vadd.xlane.f32.xlu0 %v811_v59  ;;  %v885_v59 = vmul.f32 %v2120_v21, %v2082_v56 }
 0x3e7   :  { %818 = vadd.xlane.f32.xlu0 %v817_v3  ;;  %v887_v3 = vmul.f32 %v2130_v38, %v2124_v35 }
 0x3eb   :  { %821 = vadd.xlane.f32.xlu0 %v820_v10 }
 0x3ec   :  { %815 = vadd.xlane.f32.xlu1 %v814_v1 }
 0x3ef   :  { %780 = vadd.xlane.f32.xlu0 %v779_v32 }
 0x423   :  { %v987_v2 = vpop.permute.xlu0 %986 }
 0x424   :  { %v1044_v5 = vmul.f32 %v987_v2, %v1999_v45 }
 0x426   :  { %v1056_v11 = vmul.f32 %v2120_v21, %v1044_v5 }
 0x427   :  { %v992_v14 = vpop.permute.xlu1 %991 }
 0x428   :  { %v1045_v18 = vmul.f32 %v1991_v42, %v992_v14  ;;  %1524 = vmatprep.mubr.msk.f32.mxu0 %vm76_vm0, %v1056_v11 }
 0x42a   :  { %v1057_v19 = vmul.f32 %v2120_v21, %v1045_v18 }
 0x42b   :  { %v997_v22 = vpop.permute.xlu1 %996 }
 0x42c   :  { %v1046_v24 = vmul.f32 %v997_v22, %v2015_v54  ;;  %1525 = vmatmul.mubr.msk.f32.vlgmr.msra.gmra.mrb[16].mxu0 %vm76_vm0, %v1057_v19 }
 0x42e   :  { %v1058_v9 = vmul.f32 %v2120_v21, %v1046_v24 }
 0x42f   :  { %v1002_v13 = vpop.permute.xlu1 %1001 }
 0x430   :  { %v1047_v25 = vmul.f32 %v2009_v51, %v1002_v13  ;;  %1527 = vmatprep.mubr.msk.f32.mxu0 %vm76_vm0, %v1058_v9 }
 0x432   :  { %v1059_v45 = vmul.f32 %v2120_v21, %v1047_v25 }
 0x433   :  { %v1007_v26 = vpop.permute.xlu0 %1006 }
 0x434   :  { %v1048_v42 = vmul.f32 %v1007_v26, %v2033_v4  ;;  %1528 = vmatmul.mubr.msk.f32.gmra.mrb[18].mxu0 %vm76_vm0, %v1059_v45 }
 0x436   :  { %v1060_v27 = vmul.f32 %v2127_v36, %v1048_v42 }
 0x437   :  { %v1012_v28 = vpop.permute.xlu1 %1011 }
 0x438   :  { %v1049_v54 = vmul.f32 %v2026_v60, %v1012_v28  ;;  %1530 = vmatprep.mubr.msk.f32.mxu0 %vm76_vm0, %v1060_v27 }
 0x43a   :  { %v1061_v29 = vmul.f32 %v2127_v36, %v1049_v54 }
 0x43b   :  { %v1017_v30 = vpop.permute.xlu0 %1016 }
 0x43c   :  { %v1050_v51 = vmul.f32 %v1017_v30, %v2052_v8  ;;  %1531 = vmatmul.mubr.msk.f32.gmra.mrb[20].mxu0 %vm76_vm0, %v1061_v29 }
 0x43e   :  { %v1062_v31 = vmul.f32 %v2127_v36, %v1050_v51 }
 0x43f   :  { %v1027_v32 = vpop.permute.xlu0 %1026  ;;  %v1022_v4 = vpop.permute.xlu1 %1021 }
 0x440   :  { %v1052_v20 = vmul.f32 %v1027_v32, %v2069_v37  ;;  %v1051_v33 = vmul.f32 %v2044_v15, %v1022_v4  ;;  %1533 = vmatprep.mubr.msk.f32.mxu1 %vm76_vm0, %v1062_v31 }
 0x442   :  { %v1064_v60 = vmul.f32 %v2130_v38, %v1052_v20  ;;  %v1063_v34 = vmul.f32 %v2127_v36, %v1051_v33 }
 0x443   :  { %v1037_v39 = vpop.permute.xlu0 %1036  ;;  %v1032_v40 = vpop.permute.xlu1 %1031 }
 0x444   :  { %v1054_v8 = vmul.f32 %v1037_v39, %v2090_v61  ;;  %v1053_v41 = vmul.f32 %v2062_v17, %v1032_v40  ;;  %1534 = vmatmul.mubr.msk.f32.vlgmr.msra.gmra.mrb[8].mxu1 %vm76_vm0, %v1063_v34 }
 0x445   :  { %1536 = vmatprep.mubr.msk.f32.mxu1 %vm76_vm0, %v1064_v60 }
 0x446   :  { %v1066_v37 = vmul.f32 %v2130_v38, %v1054_v8  ;;  %v1065_v15 = vmul.f32 %v2130_v38, %v1053_v41 }
 0x447   :  { %v1042_v43 = vpop.permute.xlu1 %1041 }
 0x448   :  { %v1055_v44 = vmul.f32 %v2080_v53, %v1042_v43  ;;  %1537 = vmatmul.mubr.msk.f32.gmra.mrb[10].mxu1 %vm76_vm0, %v1065_v15 }
 0x449   :  { %1539 = vmatprep.mubr.msk.f32.mxu1 %vm76_vm0, %v1066_v37 }
 0x44a   :  { %v1067_v46 = vmul.f32 %v2130_v38, %v1055_v44 }
 0x44c   :  { %1540 = vmatmul.mubr.msk.f32.gmra.mrb[12].mxu1 %vm76_vm0, %v1067_v46 }
 0x470   :  { %v813_v17 = vpop.xlane.xlu0 %812 }
 0x471   :  { %823 = vxpose.xlu1.b32.start [1/4] (short) (narrow) %v813_v17, 8 }
 0x474   :  { %v819_v61 = vpop.xlane.xlu0 %818 }
 0x478   :  { %v822_v47 = vpop.xlane.xlu0 %821 }
 0x479   :  { %v816_v48 = vpop.xlane.xlu1 %815 }
 0x47a   :  { %824 = vxpose.xlu1.b32.cont [2/4] (short) (narrow) %v816_v48, 8 }
 0x47c   :  { %v781_v49 = vpop.xlane.xlu0 %780 }
 0x47d   :  { %v782_v50 = vrot.slane %v781_v49, 4 }
 0x47e   :  { %825 = vxpose.xlu1.b32.cont [3/4] (short) (narrow) %v819_v61, 8 }
 0x47f   :  { %v783_v52 = vadd.f32 %v782_v50, %v781_v49 }
 0x481   :  { %v784_v55 = vrot.slane %v783_v52, 2 }
 0x482   :  { %826 = vxpose.xlu1.b32.end [4/4] (short) (narrow) %v822_v47, 8 }
 0x483   :  { %v785_v53 = vadd.f32 %v784_v55, %v783_v52 }
 0x485   :  { %v786_v57 = vrot.slane %v785_v53, 1 }
 0x487   :  { %v787_v58 = vadd.f32 %v786_v57, %v785_v53 }
 0x489   :  { %1598 = vpush %v787_v58 }
 0x4f6   :  { %v839_v6 = vpop.trf.xlu1 }
 0x4f7   :  { %v1274_v0 = vmul.f32 %v885_v59, %v839_v6  ;;  %v1275_v10 = vmul.f32 %v886_v62, %v839_v6  ;;  %v1276_v1 = vmul.f32 %v887_v3, %v839_v6 }
 0x4f9   :  { %v1278_v2 = vsel %vm1277_vm2, %v1274_v0, 0.0  ;;  %v1279_v5 = vsel %vm1277_vm2, %v1275_v10, 0.0  ;;  %v1281_v14 = vsel %vm1277_vm2, %v1276_v1, 0.0 }
 0x4fa   :  { %v1280_v11 = vadd.f32 %v1279_v5, %v1278_v2 }
 0x4fc   :  { %v1282_v18 = vadd.f32 %v1281_v14, %v1280_v11 }
 0x4ff   :  { %v1526_v19 = vpop.f32.mrb[16].mxu0 }
 0x500   :  { %v1230_v22 = vmul.f32 %v1526_v19, %v2092_v63  ;;  %v1170_v56 = vpop.f32.mrb[17].mxu0 }
 0x501   :  { %v1229_v21 = vmul.f32 %v1170_v56, %v2099_v7 }
 0x502   :  { %v1242_v16 = vsel %vm76_vm0, %v1230_v22, 0.0 }
 0x503   :  { %v1241_v35 = vsel %vm76_vm0, %v1229_v21, 0.0 }
 0x504   :  { %v1243_v36 = vadd.f32 %v1242_v16, %v1241_v35 }
 0x507   :  { %v1529_v38 = vpop.f32.mrb[18].mxu0 }
 0x508   :  { %v1180_v24 = vpop.f32.mrb[19].mxu0  ;;  %v1232_v9 = vmul.f32 %v1529_v38, %v2108_v23 }
 0x509   :  { %v1231_v13 = vmul.f32 %v1180_v24, %v2112_v12 }
 0x50a   :  { %v1246_v26 = vsel %vm76_vm0, %v1232_v9, 0.0 }
 0x50b   :  { %v1244_v25 = vsel %vm76_vm0, %v1231_v13, 0.0 }
 0x50c   :  { %v1245_v45 = vadd.f32 %v1244_v25, %v1243_v36 }
 0x50e   :  { %v1247_v42 = vadd.f32 %v1246_v26, %v1245_v45 }
 0x50f   :  { %v1532_v27 = vpop.f32.mrb[20].mxu0 }
 0x510   :  { %v1190_v28 = vpop.f32.mrb[21].mxu0  ;;  %v1234_v54 = vmul.f32 %v1532_v27, %v2092_v63 }
 0x511   :  { %v1233_v29 = vmul.f32 %v1190_v28, %v2099_v7 }
 0x512   :  { %v1250_v31 = vsel %vm76_vm0, %v1234_v54, 0.0 }
 0x513   :  { %v1248_v30 = vsel %vm76_vm0, %v1233_v29, 0.0 }
 0x514   :  { %v1249_v51 = vadd.f32 %v1248_v30, %v1247_v42 }
 0x516   :  { %v1251_v32 = vadd.f32 %v1250_v31, %v1249_v51 }
 0x517   :  { %v1535_v4 = vpop.f32.mrb[8].mxu1 }
 0x518   :  { %v1200_v20 = vpop.f32.mrb[9].mxu1  ;;  %v1236_v33 = vmul.f32 %v1535_v4, %v2108_v23 }
 0x519   :  { %v1235_v60 = vmul.f32 %v1200_v20, %v2112_v12 }
 0x51a   :  { %v1254_v41 = vsel %vm76_vm0, %v1236_v33, 0.0 }
 0x51b   :  { %v1252_v34 = vsel %vm76_vm0, %v1235_v60, 0.0  ;;  %v1538_v39 = vpop.f32.mrb[10].mxu1 }
 0x51c   :  { %v1253_v40 = vadd.f32 %v1252_v34, %v1251_v32  ;;  %v1210_v8 = vpop.f32.mrb[11].mxu1  ;;  %v1238_v37 = vmul.f32 %v1538_v39, %v2092_v63 }
 0x51d   :  { %v1237_v15 = vmul.f32 %v1210_v8, %v2099_v7 }
 0x51e   :  { %v1255_v43 = vadd.f32 %v1254_v41, %v1253_v40  ;;  %v1258_v47 = vsel %vm76_vm0, %v1238_v37, 0.0 }
 0x51f   :  { %v1256_v44 = vsel %vm76_vm0, %v1237_v15, 0.0  ;;  %v1541_v46 = vpop.f32.mrb[12].mxu1 }
 0x520   :  { %v1257_v17 = vadd.f32 %v1256_v44, %v1255_v43  ;;  %v1220_v61 = vpop.f32.mrb[13].mxu1  ;;  %v1240_v48 = vmul.f32 %v1541_v46, %v2108_v23 }
 0x521   :  { %v1239_v49 = vmul.f32 %v1220_v61, %v2112_v12 }
 0x522   :  { %v1259_v50 = vadd.f32 %v1258_v47, %v1257_v17  ;;  %v1262_v63 = vsel %vm76_vm0, %v1240_v48, 0.0 }
 0x523   :  { %v1260_v52 = vsel %vm76_vm0, %v1239_v49, 0.0 }
 0x524   :  { %v1261_v55 = vadd.f32 %v1260_v52, %v1259_v50 }
 0x526   :  { %v1263_v53 = vadd.f32 %v1262_v63, %v1261_v55 }
 0x528   :  { %1264 = vadd.xlane.f32.xlu0 %v1263_v53 }
 0x52c   :  { %1283 = vadd.xlane.f32.xlu0 %v1282_v18 }
 0x52d   :  { %1723 = shalt.err (!%p1720_p0)
}
 0x52e   :  { %s1724_s12 = scalar_lea.hbm %s2264_s4, 1536 }
 0x52f   :  { %p1725_p1 = scmp.ne.s32.totalorder %s2264_s4, %s1724_s12  ;;  %p1728_p2 = scmp.lt.u32.totalorder %s1724_s12, %s2264_s4 }
 0x531   :  { %p1730_p3 = pnand %p1728_p2, %p1725_p1 }
 0x533   :  { %1733 = shalt.err (!%p1730_p3)
}
 0x534   :  { %1320 = dma.vmem_to_hbm [thread:$0]  %s1315_s29, 1536, %s2264_s4, [#allocation10], %s1788_s30, %s1788_s30, %s1789_s6  }
 0x535   :  { %s1734_s18 = scalar_lea.vmem %s2211_s8, 512  ;;  %p1739_p5 = scmp.lt.s32.totalorder %s2211_s8, %s2211_s8 }
 0x536   :  { %p1735_p4 = scmp.ne.s32.totalorder %s2211_s8, %s1734_s18  ;;  %p1740_p6 = scmp.lt.s32.totalorder %s1734_s18, %s1734_s18 }
 0x538   :  { %p1741_p7 = por %p1740_p6, %p1739_p5 }
 0x53a   :  { %p1742_p8 = pnand %p1741_p7, %p1735_p4 }
 0x53c   :  { %1745 = shalt.err (!%p1742_p8)
}
 0x53d   :  { %s1746_s22 = scalar_lea.hbm %s2263_s3, 512 }
 0x53e   :  { %p1747_p9 = scmp.ne.s32.totalorder %s2263_s3, %s1746_s22  ;;  %p1750_p10 = scmp.lt.u32.totalorder %s1746_s22, %s2263_s3 }
 0x540   :  { %p1752_p11 = pnand %p1750_p10, %p1747_p9 }
 0x542   :  { %1755 = shalt.err (!%p1752_p11)
}
 0x543   :  { %1308 = dma.vmem_to_hbm [thread:$0]  %s2211_s8, 512, %s2263_s3, [#allocation4], %s1788_s30, %s1788_s30, %s1789_s6  }
 0x544   :  { %s1599_s28 = spop %1598  ;;  %s1794_s7 = smov [#allocation11]  }
 0x545   :  { %s789_s21 = smul.f32 0.5, %s1599_s28  ;;  %s1327_s8 = sshll.u32 %s1794_s7, 4  ;;  %s1328_s8 = int_to_ptr.vmem [resolvable:$true] %s1327_s8 }
 0x546   :  { %s1756_s10 = scalar_lea.vmem %s1328_s8, 16  ;;  %s1760_s11 = scalar_lea.vmem %s1328_s8, 32 }
 0x547   :  { %s790_s2 = smul.f32 0.0009765625, %s789_s21  ;;  %p1757_p12 = scmp.ne.s32.totalorder %s1328_s8, %s1756_s10 }
 0x548   :  { %p1761_p13 = scmp.lt.s32.totalorder %s1328_s8, %s1328_s8  ;;  %p1762_p0 = scmp.lt.s32.totalorder %s1760_s11, %s1756_s10 }
 0x54a   :  { %p1763_p1 = por %p1762_p0, %p1761_p13 }
 0x54c   :  { %p1764_p2 = pnand %p1763_p1, %p1757_p12 }
 0x5b5   :  { %v1265_v7 = vpop.xlane.xlu0 %1264 }
 0x5b6   :  { %v1266_v23 = vrot.slane %v1265_v7, 4 }
 0x5b8   :  { %v1267_v12 = vadd.f32 %v1266_v23, %v1265_v7 }
 0x5b9   :  { %v1284_v57 = vpop.xlane.xlu0 %1283 }
 0x5ba   :  { %v1268_v58 = vrot.slane %v1267_v12, 2  ;;  %v1285_v59 = vrot.slane %v1284_v57, 4 }
 0x5bc   :  { %v1286_v62 = vadd.f32 %v1285_v59, %v1284_v57  ;;  %v1269_v3 = vadd.f32 %v1268_v58, %v1267_v12 }
 0x5be   :  { %v1287_v6 = vrot.slane %v1286_v62, 2  ;;  %v1270_v0 = vrot.slane %v1269_v3, 1 }
 0x5c0   :  { %v1288_v10 = vadd.f32 %v1287_v6, %v1286_v62  ;;  %v1271_v1 = vadd.f32 %v1270_v0, %v1269_v3 }
 0x5c2   :  { %1600 = vpush %v1271_v1  ;;  %v1289_v2 = vrot.slane %v1288_v10, 1 }
 0x5c4   :  { %v1290_v5 = vadd.f32 %v1289_v2, %v1288_v10 }
 0x5c6   :  { %1602 = vpush %v1290_v5 }
 0x5f3   :  { %s1601_s0 = spop %1600 }
 0x5f4   :  { %s1273_s3 = smul.f32 2.0, %s1601_s0 }
 0x5f7   :  { %s1603_s30 = spop %1602 }
 0x5f8   :  { %s1292_s6 = ssub.f32 %s1603_s30, %s1273_s3 }
 0x5fa   :  { %s1293_s29 = smul.f32 0.03125, %s1292_s6 }
 0x5fc   :  { %s1294_s9 = sadd.f32 %s1293_s29, %s790_s2 }
 0x5fe   :  { %v1295_v11 = vstv %s1294_s9 }
 0x5ff   :  { %1296 = vst [vmem:[#allocation11] sm:$0x1] %v1295_v11 }
 0x600   :  { %1767 = shalt.err (!%p1764_p2)
}
 0x601   :  { %s1768_s14 = scalar_lea.hbm %s2265_s5, 16 }
 0x602   :  { %p1769_p3 = scmp.ne.s32.totalorder %s2265_s5, %s1768_s14  ;;  %p1772_p4 = scmp.lt.u32.totalorder %s1768_s14, %s2265_s5 }
 0x604   :  { %p1774_p5 = pnand %p1772_p4, %p1769_p3 }
 0x606   :  { %1777 = shalt.err (!%p1774_p5)
}
 0x607   :  { %1330 = dma.vmem_to_hbm [thread:$0]  %s1328_s8, 16, %s2265_s5, [#allocation10]  }
 0x608   :  { %1782 = dma.done.wait [#allocation4], 512  }
 0x609   :  { %1783 = vsyncadd [#allocation4], 4294966784 }
 0x60a   :  { %1784 = dma.done.wait [#allocation10], 1552  }
 0x60b   :  { %1785 = vsyncadd [#allocation10], 4294965744 }
 0x60c   :  { %1340 = vsyncpa [#allocation3], 1 }
 0x60d   :  { %1341 = vsyncpa [#allocation6], 1 }
 0x60e   :  { %1342 = vsyncpa [#allocation4], 1 }
 0x60f   :  { %1343 = vsyncpa [#allocation10], 1 }

</bundles_post_ra>
